<compile_context>
chip_gen: v5e
topology: v5e:2x2
jax: 0.10.0
libtpu: 0.0.40
codegen_flags: <defaults>
</compile_context>

<pallas_src>
import jax
import jax.numpy as jnp
from jax.experimental import pallas as pl
from jax.experimental.pallas import tpu as pltpu

DIMS = (4, 10, 6, 3)   # IrisClassifier layer widths
IN_PAD = 8             # x feature rows padded to 8 sublanes (rows 0:4 data, row 4 ones)
H1_PAD = 16            # layer-1 output rows padded to 16 (row 15 = ones carrier)
H2_PAD = 8             # layer-2 output rows padded to 8  (row 7  = ones carrier)
OUT_PAD = 8            # layer-3 output rows padded to 8  (rows 0:3 = logits)
TB_MAX = 4096          # max batch-lane tile width


def iris_mlp_kernel(x_ref, w1_ref, w2_ref, w3_ref, o_ref):
    """Fused 3-layer MLP on one batch tile, [features, batch] layout.

    x_ref : [8,  TB]  f32  rows 0:4 = features, row 4 = 1.0, rows 5:8 = 0
    w1_ref: [16,  8]  f32  [W1 | b1] zero-padded, ones-carrier at [15, 4]
    w2_ref: [8,  16]  f32  [W2 | b2] zero-padded, ones-carrier at [7, 15]
    w3_ref: [8,   8]  f32  [W3 | b3] zero-padded
    o_ref : [8,  TB]  f32  logits in rows 0:3 (rows 3:8 are exact zeros)
    """
    x = x_ref[...]                                                       # [8, TB]
    h1 = jnp.maximum(
        jnp.dot(w1_ref[...], x, preferred_element_type=jnp.float32), 0.0)   # [16, TB]
    h2 = jnp.maximum(
        jnp.dot(w2_ref[...], h1, preferred_element_type=jnp.float32), 0.0)  # [8, TB]
    o_ref[...] = jnp.dot(w3_ref[...], h2, preferred_element_type=jnp.float32)


def pack_params(params):
    """One-time parameter prep (NOT on the per-call forward path).

    Takes nn.Linear-layout params (W: [out, in], b: [out]) and folds each bias
    into its weight matrix via a homogeneous coordinate:
      - the wrapper gives x an all-ones row (row 4 of the padded input),
      - each W*_p has its bias as an extra column multiplying that ones row,
      - a single 1.0 "carrier" entry regenerates the ones row for the next layer
        (ReLU(1) = 1), so the chain x -> h1 -> h2 keeps a ones row throughout.
    Zero padding everywhere else keeps all unused rows exactly 0.
    """
    w1, b1, w2, b2, w3, b3 = params
    w1p = jnp.zeros((H1_PAD, IN_PAD), jnp.float32)
    w1p = w1p.at[:DIMS[1], :DIMS[0]].set(w1)      # W1  [10, 4]
    w1p = w1p.at[:DIMS[1], DIMS[0]].set(b1)       # b1 column (hits x ones row)
    w1p = w1p.at[H1_PAD - 1, DIMS[0]].set(1.0)    # h1 row 15 := 1 (ones carrier)

    w2p = jnp.zeros((H2_PAD, H1_PAD), jnp.float32)
    w2p = w2p.at[:DIMS[2], :DIMS[1]].set(w2)      # W2  [6, 10]
    w2p = w2p.at[:DIMS[2], H1_PAD - 1].set(b2)    # b2 column (hits h1 ones row)
    w2p = w2p.at[H2_PAD - 1, H1_PAD - 1].set(1.0) # h2 row 7 := 1 (ones carrier)

    w3p = jnp.zeros((OUT_PAD, H2_PAD), jnp.float32)
    w3p = w3p.at[:DIMS[3], :DIMS[2]].set(w3)      # W3  [3, 6]
    w3p = w3p.at[:DIMS[3], H2_PAD - 1].set(b3)    # b3 column (hits h2 ones row)
    return w1p, w2p, w3p


def _round_up(x, m):
    return (x + m - 1) // m * m


def _choose_tiling(B):
    """Pick (TB, n_tiles): TB a multiple of 128 (lane-dense, unmasked vst),
    grid >= 2 for B >= 512 so v7x megacore can split the batch, tile count grows
    past TB_MAX so tail padding stays < 128 * n_tiles."""
    B128 = _round_up(max(B, 1), 128)
    if B < 512:
        return B128, 1
    n_tiles = max(2, (B128 + TB_MAX - 1) // TB_MAX)
    TB = _round_up(B, 128 * n_tiles) // n_tiles
    return TB, n_tiles


@jax.jit
def iris_classifier_forward(x, w1p, w2p, w3p):
    """Forward pass: x [B, 4] f32, (w1p, w2p, w3p) from pack_params. Returns [B, 3]."""
    B = x.shape[0]
    TB, n_tiles = _choose_tiling(B)
    B_pad = TB * n_tiles

    # Layout plumbing (cheap XLA ops): [B,4] -> [8, B_pad] features-in-sublanes
    # slab with a ones row for the folded biases.
    xt = jnp.concatenate(
        [x.astype(jnp.float32).T,                      # rows 0:4 features
         jnp.ones((1, B), jnp.float32),                # row 4 = 1.0 (bias carrier)
         jnp.zeros((IN_PAD - DIMS[0] - 1, B), jnp.float32)],  # rows 5:8 = 0
        axis=0)
    if B_pad != B:
        xt = jnp.pad(xt, ((0, 0), (0, B_pad - B)))

    flops = 2 * B_pad * (H1_PAD * IN_PAD + H2_PAD * H1_PAD + OUT_PAD * H2_PAD)
    bytes_accessed = 4 * (2 * IN_PAD * B_pad
                          + H1_PAD * IN_PAD + H2_PAD * H1_PAD + OUT_PAD * H2_PAD)

    out = pl.pallas_call(
        iris_mlp_kernel,
        out_shape=jax.ShapeDtypeStruct((OUT_PAD, B_pad), jnp.float32),
        grid_spec=pltpu.PrefetchScalarGridSpec(
            num_scalar_prefetch=0,
            grid=(n_tiles,),
            in_specs=[
                pl.BlockSpec((IN_PAD, TB), lambda i: (0, i)),      # x tile
                pl.BlockSpec((H1_PAD, IN_PAD), lambda i: (0, 0)),  # resident weights
                pl.BlockSpec((H2_PAD, H1_PAD), lambda i: (0, 0)),
                pl.BlockSpec((OUT_PAD, H2_PAD), lambda i: (0, 0)),
            ],
            out_specs=pl.BlockSpec((OUT_PAD, TB), lambda i: (0, i)),  # lane-dense logits
        ),
        compiler_params=pltpu.CompilerParams(
            dimension_semantics=("parallel",)),
        cost_estimate=pl.CostEstimate(
            flops=flops, transcendentals=0, bytes_accessed=bytes_accessed),
    )(xt, w1p, w2p, w3p)

    # Only the 3 logit rows are read back; no full-slab slice round trip.
    return out[:DIMS[3], :B].T


def init_params(key):
    """Deterministic init mirroring nn.Linear default: U(-1/sqrt(fan_in), 1/sqrt(fan_in))."""
    dims = [(10, 4), (6, 10), (3, 6)]  # (out_features, in_features) per nn.Linear
    params = []
    for out_f, in_f in dims:
        key, kw, kb = jax.random.split(key, 3)
        bound = 1.0 / jnp.sqrt(float(in_f))
        w = jax.random.uniform(kw, (out_f, in_f), jnp.float32, -bound, bound)
        b = jax.random.uniform(kb, (out_f,), jnp.float32, -bound, bound)
        params += [w, b]
    return tuple(params)


def _reference(x, params):
    w1, b1, w2, b2, w3, b3 = params
    h = jnp.maximum(x @ w1.T + b1, 0.0)
    h = jnp.maximum(h @ w2.T + b2, 0.0)
    return h @ w3.T + b3


if __name__ == "__main__":
    key = jax.random.PRNGKey(0)
    key, kx, kx2 = jax.random.split(key, 3)

    params = init_params(key)
    w1p, w2p, w3p = pack_params(params)   # one-time packing, off the forward path

    # Small batch: single tile, grid=(1,).
    x = jax.random.normal(kx, (8, 4), dtype=jnp.float32)
    logits = jax.block_until_ready(iris_classifier_forward(x, w1p, w2p, w3p))
    ref = _reference(x, params)
    assert logits.shape == (8, 3)
    assert jnp.allclose(logits, ref, atol=1e-5, rtol=1e-5)

    # Awkward serving batch: exercises grid=(2,) (v7x megacore) + tail padding.
    x2 = jax.random.normal(kx2, (600, 4), dtype=jnp.float32)
    logits2 = jax.block_until_ready(iris_classifier_forward(x2, w1p, w2p, w3p))
    ref2 = _reference(x2, params)
    assert logits2.shape == (600, 3)
    assert jnp.allclose(logits2, ref2, atol=1e-5, rtol=1e-5)

    print("KERNEL_OK")
</pallas_src>

<mosaic_0001>
module attributes {stable_mosaic.version = 11 : i64} {
  func.func @iris_mlp_kernel(%arg0: i32, %arg1: memref<8x128xf32, #tpu.memory_space<vmem>>, %arg2: memref<16x8xf32, #tpu.memory_space<vmem>>, %arg3: memref<8x16xf32, #tpu.memory_space<vmem>>, %arg4: memref<8x8xf32, #tpu.memory_space<vmem>>, %arg5: memref<8x128xf32, #tpu.memory_space<vmem>>) attributes {dimension_semantics = [#tpu.dimension_semantics<parallel>], iteration_bounds = array<i64: 1>, scalar_prefetch = 0 : i64, scratch_operands = 0 : i64, tpu.core_type = #tpu.core_type<tc>, window_params = [{transform_indices = @transform_0, window_bounds = array<i64: 8, 128>}, {pipeline_mode = #tpu.pipeline_mode<synchronous>, transform_indices = @transform_1, window_bounds = array<i64: 16, 8>}, {pipeline_mode = #tpu.pipeline_mode<synchronous>, transform_indices = @transform_2, window_bounds = array<i64: 8, 16>}, {pipeline_mode = #tpu.pipeline_mode<synchronous>, transform_indices = @transform_3, window_bounds = array<i64: 8, 8>}, {transform_indices = @transform_4, window_bounds = array<i64: 8, 128>}]} {
    %c0 = arith.constant 0 : index
    %c0_0 = arith.constant 0 : index
    %0 = vector.load %arg1[%c0, %c0_0] : memref<8x128xf32, #tpu.memory_space<vmem>>, vector<8x128xf32>
    %c0_1 = arith.constant 0 : index
    %c0_2 = arith.constant 0 : index
    %1 = vector.load %arg2[%c0_1, %c0_2] : memref<16x8xf32, #tpu.memory_space<vmem>>, vector<16x8xf32>
    %cst = arith.constant dense<0.000000e+00> : vector<16x128xf32>
    %2 = tpu.matmul %1, %0, %cst {dimension_numbers = #tpu.dot_dimension_numbers<[1], [0], [0], [1], [0, 0, 1, 1], [], []>} : vector<16x8xf32>, vector<8x128xf32>, vector<16x128xf32> -> vector<16x128xf32>
    %cst_3 = arith.constant 0.000000e+00 : f32
    %3 = vector.broadcast %cst_3 : f32 to vector<16x128xf32>
    %4 = arith.maximumf %2, %3 : vector<16x128xf32>
    %c0_4 = arith.constant 0 : index
    %c0_5 = arith.constant 0 : index
    %5 = vector.load %arg3[%c0_4, %c0_5] : memref<8x16xf32, #tpu.memory_space<vmem>>, vector<8x16xf32>
    %cst_6 = arith.constant dense<0.000000e+00> : vector<8x128xf32>
    %6 = tpu.matmul %5, %4, %cst_6 {dimension_numbers = #tpu.dot_dimension_numbers<[1], [0], [0], [1], [0, 0, 1, 1], [], []>} : vector<8x16xf32>, vector<16x128xf32>, vector<8x128xf32> -> vector<8x128xf32>
    %cst_7 = arith.constant 0.000000e+00 : f32
    %7 = vector.broadcast %cst_7 : f32 to vector<8x128xf32>
    %8 = arith.maximumf %6, %7 : vector<8x128xf32>
    %c0_8 = arith.constant 0 : index
    %c0_9 = arith.constant 0 : index
    %9 = vector.load %arg4[%c0_8, %c0_9] : memref<8x8xf32, #tpu.memory_space<vmem>>, vector<8x8xf32>
    %cst_10 = arith.constant dense<0.000000e+00> : vector<8x128xf32>
    %10 = tpu.matmul %9, %8, %cst_10 {dimension_numbers = #tpu.dot_dimension_numbers<[1], [0], [0], [1], [0, 0, 1, 1], [], []>} : vector<8x8xf32>, vector<8x128xf32>, vector<8x128xf32> -> vector<8x128xf32>
    %c0_11 = arith.constant 0 : index
    %c0_12 = arith.constant 0 : index
    %11 = vector.load %arg5[%c0_11, %c0_12] : memref<8x128xf32, #tpu.memory_space<vmem>>, vector<8x128xf32>
    tpu.vector_store %arg5[%c0_11, %c0_12], %10 {strides = array<i32>} : memref<8x128xf32, #tpu.memory_space<vmem>>, vector<8x128xf32>,
    return
  }
  func.func @transform_0(%arg0: i32) -> (i32, i32) {
    %c0_i32 = arith.constant 0 : i32
    %c0_i32_0 = arith.constant 0 : i32
    return %c0_i32, %arg0 : i32, i32
  }
  func.func @transform_1(%arg0: i32) -> (i32, i32) {
    %c0_i32 = arith.constant 0 : i32
    %c0_i32_0 = arith.constant 0 : i32
    %c0_i32_1 = arith.constant 0 : i32
    return %c0_i32, %c0_i32_0 : i32, i32
  }
  func.func @transform_2(%arg0: i32) -> (i32, i32) {
    %c0_i32 = arith.constant 0 : i32
    %c0_i32_0 = arith.constant 0 : i32
    %c0_i32_1 = arith.constant 0 : i32
    return %c0_i32, %c0_i32_0 : i32, i32
  }
  func.func @transform_3(%arg0: i32) -> (i32, i32) {
    %c0_i32 = arith.constant 0 : i32
    %c0_i32_0 = arith.constant 0 : i32
    %c0_i32_1 = arith.constant 0 : i32
    return %c0_i32, %c0_i32_0 : i32, i32
  }
  func.func @transform_4(%arg0: i32) -> (i32, i32) {
    %c0_i32 = arith.constant 0 : i32
    %c0_i32_0 = arith.constant 0 : i32
    return %c0_i32, %arg0 : i32, i32
  }
}

</mosaic_0001>

<bundles_post_ra>
// kernel: iris_classifier_forward.1
= control target key start
LH: loop header
LB: loop body
LE: loop exit
PB: predicated region body
PF: predicated region fallthrough
CT: control target
= control target key end

     0   :  { %vm20_vm0 = vcmask 64512   ;;  %vm53_vm1 = vcmask 130048   ;;  %s158_s0 = inlined_call_operand.vmem [shape: f32[8,128], index: 0, kind: input, shape index: {}]   ;;  %s159_s1 = inlined_call_operand.vmem [shape: f32[16,8], index: 1, kind: input, shape index: {}]   ;;  %s160_s2 = inlined_call_operand.vmem [shape: f32[8,16], index: 2, kind: input, shape index: {}]   ;;  %s161_s3 = inlined_call_operand.vmem [shape: f32[8,8], index: 3, kind: input, shape index: {}]   ;;  %s162_s4 = inlined_call_operand.vmem [shape: f32[8,128], index: 4, kind: output, shape index: {}]  }
   0x1   :  { %v17_v0 = vld [vmem:[%s158_s0] sm:$0xff]  ;;  %v19_v1 = vld [vmem:[%s159_s1 + $0x8] sm:$0xff] }
   0x2   :  { %v18_v2 = vld [vmem:[%s159_s1] sm:$0xff]  ;;  %111 = vmatpush.msra.mxu3 %v17_v0  ;;  %42 = vmatpush.msra.mxu0 %v17_v0 }
   0x3   :  { %108 = vmatmul.msk.f32.vlgmr.msra.gmra.mxu3 %vm20_vm0, %v19_v1  ;;  %107 = vmatmul.msk.f32.vlgmr.msra.gmra.mxu0 %vm20_vm0, %v18_v2  ;;  %v52_v7 = vld [vmem:[%s160_s2] sm:$0xff] }
   0x4   :  { %v78_v10 = vld [vmem:[%s161_s3] sm:$0xff] }
  0x80   :  { %v44_v3 = vpop.f32.mrf.mxu0 }
  0x81   :  { %v50_v6 = vmax.f32 %v44_v3, 0.0 }
  0x86   :  { %v47_v4 = vpop.f32.mrf.mxu3 }
  0x87   :  { %v51_v5 = vmax.f32 %v47_v4, 0.0 }
  0x89   :  { %71 = vmatpush.msra.mxu1 %v51_v5 }
  0x8b   :  { %72 = vmatpush.msra.mxu1 %v50_v6 }
  0x8c   :  { %109 = vmatmul.msk.f32.vlgmr.msra.gmra.mxu1 %vm53_vm1, %v52_v7 }
 0x109   :  { %v74_v8 = vpop.f32.mrf.mxu1 }
 0x10a   :  { %v77_v9 = vmax.f32 %v74_v8, 0.0 }
 0x10c   :  { %97 = vmatpush.msra.mxu2 %v77_v9 }
 0x10d   :  { %110 = vmatmul.msk.f32.vlgmr.msra.gmra.mxu2 %vm20_vm0, %v78_v10 }
 0x190   :  { %v99_v11 = vpop.f32.mrf.mxu2 }
 0x191   :  { %102 = vst [vmem:[%s162_s4] sm:$0xff] %v99_v11 }

</bundles_post_ra>
